<compile_context>
chip_gen: v7x
topology: tpu7x:2x2x1
jax: 0.10.0
libtpu: 0.0.40
codegen_flags: <defaults>
</compile_context>

<pallas_src>
import functools

import jax
import jax.numpy as jnp
from jax.experimental import pallas as pl
from jax.experimental.pallas import tpu as pltpu


def _reverse_scmb_kernel(x_ref, wb1_ref, b1_ref, wd2_ref, b2_ref,
                         wb3_ref, b3_ref, wd4_ref, b4_ref,
                         o_ref,
                         xpad_ref, hpad_ref,
                         *, H, BB, matmul_dtype):
    """One batch chunk of BB images, fully fused block (lane-dense layout).

    x_ref  : (BB, H, W*C0)          lane-dense input chunk
    wb1_ref: (3, W*C0, W*C1)        banded 3x3 conv1 weights (one slice per kh)
    b1_ref : (1, W*C1)              conv1 bias, tiled W times
    wd2_ref: (W*C1, W*C2)           block-diagonal 1x1 conv2 weight
    b2_ref : (1, W*C2)
    wb3_ref: (3, W*C2, W*C3)        banded 3x3 conv3 weights
    b3_ref : (1, W*C3)
    wd4_ref: (W*C3, W*C4)           block-diagonal 1x1 conv4 weight
    b4_ref : (1, W*C4)
    o_ref  : (BB, H, W*C4)          lane-dense packed output
    xpad_ref/hpad_ref: height-padded lane-dense activation scratches (BB, H+2, W*C)
    """
    WC0 = xpad_ref.shape[-1]
    WC2 = hpad_ref.shape[-1]
    WC4 = o_ref.shape[-1]
    R = BB * H  # matmul M dimension (W lives in the lanes)

    def banded_conv3x3(pad_ref, wb_ref, b_ref):
        # 3 lane-dense MXU matmuls (one per kh), accumulated in f32 vregs.
        pad = pad_ref[...]
        acc = None
        for kh in range(3):
            lhs = pad[:, kh:kh + H, :].reshape(R, pad.shape[-1])
            part = jnp.dot(lhs, wb_ref[kh], preferred_element_type=jnp.float32)
            acc = part if acc is None else acc + part
        return acc + b_ref[...]

    def blockdiag_conv1x1(h, wd_ref, b_ref):
        return jnp.dot(h.astype(matmul_dtype), wd_ref[...],
                       preferred_element_type=jnp.float32) + b_ref[...]

    # Zero only the halo rows (top/bottom) of the padded scratches; the interior is
    # fully overwritten below, so no whole-buffer zero fill is needed.
    zrow0 = jnp.zeros((BB, 1, WC0), xpad_ref.dtype)
    xpad_ref[:, 0:1, :] = zrow0
    xpad_ref[:, H + 1:H + 2, :] = zrow0
    zrow2 = jnp.zeros((BB, 1, WC2), hpad_ref.dtype)
    hpad_ref[:, 0:1, :] = zrow2
    hpad_ref[:, H + 1:H + 2, :] = zrow2

    # ---- conv1: 3x3 + bias + ReLU (banded, lane-dense) ----
    xpad_ref[:, 1:H + 1, :] = x_ref[...].astype(xpad_ref.dtype)
    h1 = jnp.maximum(banded_conv3x3(xpad_ref, wb1_ref, b1_ref), 0.0)

    # ---- conv2: 1x1 + bias + ReLU (block-diagonal, lane-dense) ----
    h2 = jnp.maximum(blockdiag_conv1x1(h1, wd2_ref, b2_ref), 0.0)

    # ---- conv3: 3x3 + bias + ReLU ----
    hpad_ref[:, 1:H + 1, :] = h2.reshape(BB, H, WC2).astype(hpad_ref.dtype)
    h3 = jnp.maximum(banded_conv3x3(hpad_ref, wb3_ref, b3_ref), 0.0)

    # ---- conv4: 1x1 + bias, no ReLU; result is already in packed layout ----
    y = blockdiag_conv1x1(h3, wd4_ref, b4_ref)            # (R, W*C4), f32
    o_ref[...] = y.reshape(BB, H, WC4).astype(o_ref.dtype)


def _make_banded_weights(w_hwio, W):
    """(3, 3, Cin, Cout) HWIO -> (3, W*Cin, W*Cout) block-banded weights.

    wb[kh, wi*Cin+c, wo*Cout+d] = w[kh, kw, c, d] where wi = wo + kw - 1 (pad=1);
    out-of-range wi blocks are zero, which implements width zero-padding implicitly.
    """
    kh_sz, kw_sz, Cin, Cout = w_hwio.shape
    wi = jnp.arange(W)
    wo = jnp.arange(W)
    kw = jnp.arange(kw_sz)
    ind = (wi[None, :, None] == (wo[None, None, :] + kw[:, None, None] - 1))
    ind = ind.astype(w_hwio.dtype)                         # (kw, wi, wo)
    wb = jnp.einsum('kio,hkcd->hicod', ind, w_hwio)        # (kh, wi, Cin, wo, Cout)
    return wb.reshape(kh_sz, W * Cin, W * Cout)


def _make_blockdiag_weight(w_io, W):
    """(Cin, Cout) 1x1 weight -> (W*Cin, W*Cout) block-diagonal weight."""
    Cin, Cout = w_io.shape
    eye = jnp.eye(W, dtype=w_io.dtype)
    wd = jnp.einsum('io,cd->icod', eye, w_io)              # (wi, Cin, wo, Cout)
    return wd.reshape(W * Cin, W * Cout)


def _pick_batch_block(B, max_bb):
    """Images per grid step. Prefer >= 2 grid steps (feeds both v7x TensorCores and
    enables DMA double-buffer overlap), subject to divisibility."""
    if B < 2:
        return max(1, B)
    bb = max(1, min(max_bb, B // 2))
    while B % bb:
        bb -= 1
    return bb


def reverse_scmb_block(x, params, *, max_batch_block=8, matmul_dtype=jnp.float32):
    """Fused forward pass of reverseSCMBBlock. x: (B, H, W, Cin) NHWC."""
    B, H, W, C0 = x.shape
    w1, b1 = params['w1'], params['b1']     # (3,3,C0,C1), (C1,)
    w2, b2 = params['w2'], params['b2']     # (C1,C2), (C2,)
    w3, b3 = params['w3'], params['b3']     # (3,3,C2,C3), (C3,)
    w4, b4 = params['w4'], params['b4']     # (C3,C4), (C4,)
    C1, C2, C3, C4 = w1.shape[-1], w2.shape[-1], w3.shape[-1], w4.shape[-1]

    BB = _pick_batch_block(B, max_batch_block)

    # Host-side weight restructuring (tiny, done once under jit/trace).
    wb1 = _make_banded_weights(w1, W).astype(matmul_dtype)      # (3, W*C0, W*C1)
    wd2 = _make_blockdiag_weight(w2, W).astype(matmul_dtype)    # (W*C1, W*C2)
    wb3 = _make_banded_weights(w3, W).astype(matmul_dtype)      # (3, W*C2, W*C3)
    wd4 = _make_blockdiag_weight(w4, W).astype(matmul_dtype)    # (W*C3, W*C4)
    b1t = jnp.tile(b1, W).reshape(1, W * C1).astype(jnp.float32)
    b2t = jnp.tile(b2, W).reshape(1, W * C2).astype(jnp.float32)
    b3t = jnp.tile(b3, W).reshape(1, W * C3).astype(jnp.float32)
    b4t = jnp.tile(b4, W).reshape(1, W * C4).astype(jnp.float32)

    # Lane-dense views (free reshapes of contiguous trailing dims).
    x2d = x.reshape(B, H, W * C0)

    kernel = functools.partial(_reverse_scmb_kernel, H=H, BB=BB,
                               matmul_dtype=matmul_dtype)

    out_packed = pl.pallas_call(
        kernel,
        out_shape=jax.ShapeDtypeStruct((B, H, W * C4), x.dtype),
        grid_spec=pltpu.PrefetchScalarGridSpec(
            num_scalar_prefetch=0,
            grid=(B // BB,),
            in_specs=[
                pl.BlockSpec((BB, H, W * C0), lambda b: (b, 0, 0)),
                pl.BlockSpec((3, W * C0, W * C1), lambda b: (0, 0, 0)),
                pl.BlockSpec((1, W * C1), lambda b: (0, 0)),
                pl.BlockSpec((W * C1, W * C2), lambda b: (0, 0)),
                pl.BlockSpec((1, W * C2), lambda b: (0, 0)),
                pl.BlockSpec((3, W * C2, W * C3), lambda b: (0, 0, 0)),
                pl.BlockSpec((1, W * C3), lambda b: (0, 0)),
                pl.BlockSpec((W * C3, W * C4), lambda b: (0, 0)),
                pl.BlockSpec((1, W * C4), lambda b: (0, 0)),
            ],
            out_specs=pl.BlockSpec((BB, H, W * C4), lambda b: (b, 0, 0)),
            scratch_shapes=[
                pltpu.VMEM((BB, H + 2, W * C0), matmul_dtype),  # height-padded input
                pltpu.VMEM((BB, H + 2, W * C2), matmul_dtype),  # height-padded mid act
            ],
        ),
        compiler_params=pltpu.CompilerParams(
            dimension_semantics=("parallel",),
            vmem_limit_bytes=32 * 1024 * 1024,
        ),
    )(x2d, wb1, b1t, wd2, b2t, wb3, b3t, wd4, b4t)

    return out_packed.reshape(B, H, W, C4)


def init_params(key, in_channel, out_channel):
    """Synthetic params matching reverseSCMBBlock.__init__:
       conv1: 3x3 in   -> in//2  (+ReLU)
       conv2: 1x1 in//2-> in//4  (+ReLU)
       conv3: 3x3 in//4-> in//4  (+ReLU)
       conv4: 1x1 in//4-> out    (no ReLU)
       Weights: orthogonal init; biases: zeros (as in _initialize_weights)."""
    c_half, c_quarter = in_channel // 2, in_channel // 4
    ortho = jax.nn.initializers.orthogonal()
    k1, k2, k3, k4 = jax.random.split(key, 4)

    def conv_w(k, out_c, in_c, ksz):
        w_oihw = ortho(k, (out_c, in_c, ksz, ksz), jnp.float32)  # PyTorch OIHW
        return jnp.transpose(w_oihw, (2, 3, 1, 0))               # -> HWIO

    return dict(
        w1=conv_w(k1, c_half, in_channel, 3),
        b1=jnp.zeros((c_half,), jnp.float32),
        w2=conv_w(k2, c_quarter, c_half, 1)[0, 0],
        b2=jnp.zeros((c_quarter,), jnp.float32),
        w3=conv_w(k3, c_quarter, c_quarter, 3),
        b3=jnp.zeros((c_quarter,), jnp.float32),
        w4=conv_w(k4, out_channel, c_quarter, 1)[0, 0],
        b4=jnp.zeros((out_channel,), jnp.float32),
    )


def _ref_forward(x, params):
    """Pure-JAX reference (same math as the PyTorch module, NHWC layout)."""
    def conv(h, w_hwio, b, relu):
        y = jax.lax.conv_general_dilated(
            h, w_hwio, window_strides=(1, 1), padding='SAME',
            dimension_numbers=('NHWC', 'HWIO', 'NHWC'))
        y = y + b[None, None, None, :]
        return jnp.maximum(y, 0.0) if relu else y
    h = conv(x, params['w1'], params['b1'], True)
    h = conv(h, params['w2'][None, None], params['b2'], True)
    h = conv(h, params['w3'], params['b3'], True)
    return conv(h, params['w4'][None, None], params['b4'], False)


if __name__ == "__main__":
    key = jax.random.PRNGKey(0)
    kx, kp = jax.random.split(key)

    B, H, W = 2, 16, 16
    in_channel, out_channel = 16, 8   # in//2 = 8, in//4 = 4; W*out = 128 lanes

    # PyTorch input would be NCHW (B, in_channel, H, W); we use NHWC here.
    x = jax.random.normal(kx, (B, H, W, in_channel), jnp.float32)
    params = init_params(kp, in_channel, out_channel)

    matmul_dtype = jnp.float32
    out = reverse_scmb_block(x, params, matmul_dtype=matmul_dtype)
    out = jax.block_until_ready(out)

    assert out.shape == (B, H, W, out_channel), out.shape
    ref = _ref_forward(x, params)
    tol = 1e-4 if matmul_dtype == jnp.float32 else 2e-2  # bf16 operands lose precision
    if not jnp.allclose(out, ref, atol=tol, rtol=tol):
        raise AssertionError("Pallas output mismatches JAX reference")

    print("KERNEL_OK")
</pallas_src>

<mosaic_0001>
module attributes {stable_mosaic.version = 11 : i64} {
  func.func @_reverse_scmb_kernel(%arg0: i32, %arg1: memref<1x16x256xf32, #tpu.memory_space<vmem>>, %arg2: memref<3x256x128xf32, #tpu.memory_space<vmem>>, %arg3: memref<1x128xf32, #tpu.memory_space<vmem>>, %arg4: memref<128x64xf32, #tpu.memory_space<vmem>>, %arg5: memref<1x64xf32, #tpu.memory_space<vmem>>, %arg6: memref<3x64x64xf32, #tpu.memory_space<vmem>>, %arg7: memref<1x64xf32, #tpu.memory_space<vmem>>, %arg8: memref<64x128xf32, #tpu.memory_space<vmem>>, %arg9: memref<1x128xf32, #tpu.memory_space<vmem>>, %arg10: memref<1x16x128xf32, #tpu.memory_space<vmem>>, %arg11: memref<1x18x256xf32, #tpu.memory_space<vmem>>, %arg12: memref<1x18x64xf32, #tpu.memory_space<vmem>>) attributes {dimension_semantics = [#tpu.dimension_semantics<parallel>], iteration_bounds = array<i64: 2>, scalar_prefetch = 0 : i64, scratch_operands = 2 : i64, tpu.core_type = #tpu.core_type<tc>, window_params = [{transform_indices = @transform_0, window_bounds = array<i64: 1, 16, 256>}, {pipeline_mode = #tpu.pipeline_mode<synchronous>, transform_indices = @transform_1, window_bounds = array<i64: 3, 256, 128>}, {pipeline_mode = #tpu.pipeline_mode<synchronous>, transform_indices = @transform_2, window_bounds = array<i64: 1, 128>}, {pipeline_mode = #tpu.pipeline_mode<synchronous>, transform_indices = @transform_3, window_bounds = array<i64: 128, 64>}, {pipeline_mode = #tpu.pipeline_mode<synchronous>, transform_indices = @transform_4, window_bounds = array<i64: 1, 64>}, {pipeline_mode = #tpu.pipeline_mode<synchronous>, transform_indices = @transform_5, window_bounds = array<i64: 3, 64, 64>}, {pipeline_mode = #tpu.pipeline_mode<synchronous>, transform_indices = @transform_6, window_bounds = array<i64: 1, 64>}, {pipeline_mode = #tpu.pipeline_mode<synchronous>, transform_indices = @transform_7, window_bounds = array<i64: 64, 128>}, {pipeline_mode = #tpu.pipeline_mode<synchronous>, transform_indices = @transform_8, window_bounds = array<i64: 1, 128>}, {transform_indices = @transform_9, window_bounds = array<i64: 1, 16, 128>}]} {
    %cst = arith.constant 0.000000e+00 : f32
    %0 = vector.broadcast %cst : f32 to vector<1x1x256xf32>
    %c0 = arith.constant 0 : index
    %c0_0 = arith.constant 0 : index
    %c0_1 = arith.constant 0 : index
    %1 = vector.load %arg11[%c0, %c0_0, %c0_1] : memref<1x18x256xf32, #tpu.memory_space<vmem>>, vector<1x1x256xf32>
    tpu.vector_store %arg11[%c0, %c0_0, %c0_1], %0 {strides = array<i32>} : memref<1x18x256xf32, #tpu.memory_space<vmem>>, vector<1x1x256xf32>,
    %c0_2 = arith.constant 0 : index
    %c17 = arith.constant 17 : index
    %c0_3 = arith.constant 0 : index
    %2 = vector.load %arg11[%c0_2, %c17, %c0_3] : memref<1x18x256xf32, #tpu.memory_space<vmem>>, vector<1x1x256xf32>
    tpu.vector_store %arg11[%c0_2, %c17, %c0_3], %0 {strides = array<i32>} : memref<1x18x256xf32, #tpu.memory_space<vmem>>, vector<1x1x256xf32>,
    %cst_4 = arith.constant 0.000000e+00 : f32
    %3 = vector.broadcast %cst_4 : f32 to vector<1x1x64xf32>
    %c0_5 = arith.constant 0 : index
    %c0_6 = arith.constant 0 : index
    %c0_7 = arith.constant 0 : index
    %4 = vector.load %arg12[%c0_5, %c0_6, %c0_7] : memref<1x18x64xf32, #tpu.memory_space<vmem>>, vector<1x1x64xf32>
    tpu.vector_store %arg12[%c0_5, %c0_6, %c0_7], %3 {strides = array<i32>} : memref<1x18x64xf32, #tpu.memory_space<vmem>>, vector<1x1x64xf32>,
    %c0_8 = arith.constant 0 : index
    %c17_9 = arith.constant 17 : index
    %c0_10 = arith.constant 0 : index
    %5 = vector.load %arg12[%c0_8, %c17_9, %c0_10] : memref<1x18x64xf32, #tpu.memory_space<vmem>>, vector<1x1x64xf32>
    tpu.vector_store %arg12[%c0_8, %c17_9, %c0_10], %3 {strides = array<i32>} : memref<1x18x64xf32, #tpu.memory_space<vmem>>, vector<1x1x64xf32>,
    %c0_11 = arith.constant 0 : index
    %c0_12 = arith.constant 0 : index
    %c0_13 = arith.constant 0 : index
    %6 = vector.load %arg1[%c0_11, %c0_12, %c0_13] : memref<1x16x256xf32, #tpu.memory_space<vmem>>, vector<1x16x256xf32>
    %c0_14 = arith.constant 0 : index
    %c1 = arith.constant 1 : index
    %c0_15 = arith.constant 0 : index
    %7 = vector.load %arg11[%c0_14, %c1, %c0_15] : memref<1x18x256xf32, #tpu.memory_space<vmem>>, vector<1x16x256xf32>
    tpu.vector_store %arg11[%c0_14, %c1, %c0_15], %6 {strides = array<i32>} : memref<1x18x256xf32, #tpu.memory_space<vmem>>, vector<1x16x256xf32>,
    %c0_16 = arith.constant 0 : index
    %c0_17 = arith.constant 0 : index
    %c0_18 = arith.constant 0 : index
    %8 = vector.load %arg11[%c0_16, %c0_17, %c0_18] : memref<1x18x256xf32, #tpu.memory_space<vmem>>, vector<1x18x256xf32>
    %9 = vector.extract_strided_slice %8 {offsets = [0, 0, 0], sizes = [1, 16, 256], strides = [1, 1, 1]} : vector<1x18x256xf32> to vector<1x16x256xf32>
    %10 = vector.shape_cast %9 : vector<1x16x256xf32> to vector<16x256xf32>
    %c0_19 = arith.constant 0 : index
    %c0_20 = arith.constant 0 : index
    %c0_21 = arith.constant 0 : index
    %11 = vector.load %arg2[%c0_19, %c0_20, %c0_21] : memref<3x256x128xf32, #tpu.memory_space<vmem>>, vector<1x256x128xf32>
    %12 = vector.shape_cast %11 : vector<1x256x128xf32> to vector<256x128xf32>
    %cst_22 = arith.constant dense<0.000000e+00> : vector<16x128xf32>
    %13 = tpu.matmul %10, %12, %cst_22 {dimension_numbers = #tpu.dot_dimension_numbers<[1], [0], [0], [1], [0, 0, 1, 1], [], []>} : vector<16x256xf32>, vector<256x128xf32>, vector<16x128xf32> -> vector<16x128xf32>
    %14 = vector.extract_strided_slice %8 {offsets = [0, 1, 0], sizes = [1, 16, 256], strides = [1, 1, 1]} : vector<1x18x256xf32> to vector<1x16x256xf32>
    %15 = vector.shape_cast %14 : vector<1x16x256xf32> to vector<16x256xf32>
    %c1_23 = arith.constant 1 : index
    %c0_24 = arith.constant 0 : index
    %c0_25 = arith.constant 0 : index
    %16 = vector.load %arg2[%c1_23, %c0_24, %c0_25] : memref<3x256x128xf32, #tpu.memory_space<vmem>>, vector<1x256x128xf32>
    %17 = vector.shape_cast %16 : vector<1x256x128xf32> to vector<256x128xf32>
    %cst_26 = arith.constant dense<0.000000e+00> : vector<16x128xf32>
    %18 = tpu.matmul %15, %17, %cst_26 {dimension_numbers = #tpu.dot_dimension_numbers<[1], [0], [0], [1], [0, 0, 1, 1], [], []>} : vector<16x256xf32>, vector<256x128xf32>, vector<16x128xf32> -> vector<16x128xf32>
    %19 = arith.addf %13, %18 : vector<16x128xf32>
    %20 = vector.extract_strided_slice %8 {offsets = [0, 2, 0], sizes = [1, 16, 256], strides = [1, 1, 1]} : vector<1x18x256xf32> to vector<1x16x256xf32>
    %21 = vector.shape_cast %20 : vector<1x16x256xf32> to vector<16x256xf32>
    %c2 = arith.constant 2 : index
    %c0_27 = arith.constant 0 : index
    %c0_28 = arith.constant 0 : index
    %22 = vector.load %arg2[%c2, %c0_27, %c0_28] : memref<3x256x128xf32, #tpu.memory_space<vmem>>, vector<1x256x128xf32>
    %23 = vector.shape_cast %22 : vector<1x256x128xf32> to vector<256x128xf32>
    %cst_29 = arith.constant dense<0.000000e+00> : vector<16x128xf32>
    %24 = tpu.matmul %21, %23, %cst_29 {dimension_numbers = #tpu.dot_dimension_numbers<[1], [0], [0], [1], [0, 0, 1, 1], [], []>} : vector<16x256xf32>, vector<256x128xf32>, vector<16x128xf32> -> vector<16x128xf32>
    %25 = arith.addf %19, %24 : vector<16x128xf32>
    %c0_30 = arith.constant 0 : index
    %c0_31 = arith.constant 0 : index
    %26 = vector.load %arg3[%c0_30, %c0_31] : memref<1x128xf32, #tpu.memory_space<vmem>>, vector<1x128xf32>
    %27 = vector.broadcast %26 : vector<1x128xf32> to vector<16x128xf32>
    %28 = arith.addf %25, %27 : vector<16x128xf32>
    %cst_32 = arith.constant 0.000000e+00 : f32
    %29 = vector.broadcast %cst_32 : f32 to vector<16x128xf32>
    %30 = arith.maximumf %28, %29 : vector<16x128xf32>
    %c0_33 = arith.constant 0 : index
    %c0_34 = arith.constant 0 : index
    %31 = vector.load %arg4[%c0_33, %c0_34] : memref<128x64xf32, #tpu.memory_space<vmem>>, vector<128x64xf32>
    %cst_35 = arith.constant dense<0.000000e+00> : vector<16x64xf32>
    %32 = tpu.matmul %30, %31, %cst_35 {dimension_numbers = #tpu.dot_dimension_numbers<[1], [0], [0], [1], [0, 0, 1, 1], [], []>} : vector<16x128xf32>, vector<128x64xf32>, vector<16x64xf32> -> vector<16x64xf32>
    %c0_36 = arith.constant 0 : index
    %c0_37 = arith.constant 0 : index
    %33 = vector.load %arg5[%c0_36, %c0_37] : memref<1x64xf32, #tpu.memory_space<vmem>>, vector<1x64xf32>
    %34 = vector.broadcast %33 : vector<1x64xf32> to vector<16x64xf32>
    %35 = arith.addf %32, %34 : vector<16x64xf32>
    %cst_38 = arith.constant 0.000000e+00 : f32
    %36 = vector.broadcast %cst_38 : f32 to vector<16x64xf32>
    %37 = arith.maximumf %35, %36 : vector<16x64xf32>
    %38 = vector.shape_cast %37 : vector<16x64xf32> to vector<1x16x64xf32>
    %c0_39 = arith.constant 0 : index
    %c1_40 = arith.constant 1 : index
    %c0_41 = arith.constant 0 : index
    %39 = vector.load %arg12[%c0_39, %c1_40, %c0_41] : memref<1x18x64xf32, #tpu.memory_space<vmem>>, vector<1x16x64xf32>
    tpu.vector_store %arg12[%c0_39, %c1_40, %c0_41], %38 {strides = array<i32>} : memref<1x18x64xf32, #tpu.memory_space<vmem>>, vector<1x16x64xf32>,
    %c0_42 = arith.constant 0 : index
    %c0_43 = arith.constant 0 : index
    %c0_44 = arith.constant 0 : index
    %40 = vector.load %arg12[%c0_42, %c0_43, %c0_44] : memref<1x18x64xf32, #tpu.memory_space<vmem>>, vector<1x18x64xf32>
    %41 = vector.extract_strided_slice %40 {offsets = [0, 0, 0], sizes = [1, 16, 64], strides = [1, 1, 1]} : vector<1x18x64xf32> to vector<1x16x64xf32>
    %42 = vector.shape_cast %41 : vector<1x16x64xf32> to vector<16x64xf32>
    %c0_45 = arith.constant 0 : index
    %c0_46 = arith.constant 0 : index
    %c0_47 = arith.constant 0 : index
    %43 = vector.load %arg6[%c0_45, %c0_46, %c0_47] : memref<3x64x64xf32, #tpu.memory_space<vmem>>, vector<1x64x64xf32>
    %44 = vector.shape_cast %43 : vector<1x64x64xf32> to vector<64x64xf32>
    %cst_48 = arith.constant dense<0.000000e+00> : vector<16x64xf32>
    %45 = tpu.matmul %42, %44, %cst_48 {dimension_numbers = #tpu.dot_dimension_numbers<[1], [0], [0], [1], [0, 0, 1, 1], [], []>} : vector<16x64xf32>, vector<64x64xf32>, vector<16x64xf32> -> vector<16x64xf32>
    %46 = vector.extract_strided_slice %40 {offsets = [0, 1, 0], sizes = [1, 16, 64], strides = [1, 1, 1]} : vector<1x18x64xf32> to vector<1x16x64xf32>
    %47 = vector.shape_cast %46 : vector<1x16x64xf32> to vector<16x64xf32>
    %c1_49 = arith.constant 1 : index
    %c0_50 = arith.constant 0 : index
    %c0_51 = arith.constant 0 : index
    %48 = vector.load %arg6[%c1_49, %c0_50, %c0_51] : memref<3x64x64xf32, #tpu.memory_space<vmem>>, vector<1x64x64xf32>
    %49 = vector.shape_cast %48 : vector<1x64x64xf32> to vector<64x64xf32>
    %cst_52 = arith.constant dense<0.000000e+00> : vector<16x64xf32>
    %50 = tpu.matmul %47, %49, %cst_52 {dimension_numbers = #tpu.dot_dimension_numbers<[1], [0], [0], [1], [0, 0, 1, 1], [], []>} : vector<16x64xf32>, vector<64x64xf32>, vector<16x64xf32> -> vector<16x64xf32>
    %51 = arith.addf %45, %50 : vector<16x64xf32>
    %52 = vector.extract_strided_slice %40 {offsets = [0, 2, 0], sizes = [1, 16, 64], strides = [1, 1, 1]} : vector<1x18x64xf32> to vector<1x16x64xf32>
    %53 = vector.shape_cast %52 : vector<1x16x64xf32> to vector<16x64xf32>
    %c2_53 = arith.constant 2 : index
    %c0_54 = arith.constant 0 : index
    %c0_55 = arith.constant 0 : index
    %54 = vector.load %arg6[%c2_53, %c0_54, %c0_55] : memref<3x64x64xf32, #tpu.memory_space<vmem>>, vector<1x64x64xf32>
    %55 = vector.shape_cast %54 : vector<1x64x64xf32> to vector<64x64xf32>
    %cst_56 = arith.constant dense<0.000000e+00> : vector<16x64xf32>
    %56 = tpu.matmul %53, %55, %cst_56 {dimension_numbers = #tpu.dot_dimension_numbers<[1], [0], [0], [1], [0, 0, 1, 1], [], []>} : vector<16x64xf32>, vector<64x64xf32>, vector<16x64xf32> -> vector<16x64xf32>
    %57 = arith.addf %51, %56 : vector<16x64xf32>
    %c0_57 = arith.constant 0 : index
    %c0_58 = arith.constant 0 : index
    %58 = vector.load %arg7[%c0_57, %c0_58] : memref<1x64xf32, #tpu.memory_space<vmem>>, vector<1x64xf32>
    %59 = vector.broadcast %58 : vector<1x64xf32> to vector<16x64xf32>
    %60 = arith.addf %57, %59 : vector<16x64xf32>
    %cst_59 = arith.constant 0.000000e+00 : f32
    %61 = vector.broadcast %cst_59 : f32 to vector<16x64xf32>
    %62 = arith.maximumf %60, %61 : vector<16x64xf32>
    %c0_60 = arith.constant 0 : index
    %c0_61 = arith.constant 0 : index
    %63 = vector.load %arg8[%c0_60, %c0_61] : memref<64x128xf32, #tpu.memory_space<vmem>>, vector<64x128xf32>
    %cst_62 = arith.constant dense<0.000000e+00> : vector<16x128xf32>
    %64 = tpu.matmul %62, %63, %cst_62 {dimension_numbers = #tpu.dot_dimension_numbers<[1], [0], [0], [1], [0, 0, 1, 1], [], []>} : vector<16x64xf32>, vector<64x128xf32>, vector<16x128xf32> -> vector<16x128xf32>
    %c0_63 = arith.constant 0 : index
    %c0_64 = arith.constant 0 : index
    %65 = vector.load %arg9[%c0_63, %c0_64] : memref<1x128xf32, #tpu.memory_space<vmem>>, vector<1x128xf32>
    %66 = vector.broadcast %65 : vector<1x128xf32> to vector<16x128xf32>
    %67 = arith.addf %64, %66 : vector<16x128xf32>
    %68 = vector.shape_cast %67 : vector<16x128xf32> to vector<1x16x128xf32>
    %c0_65 = arith.constant 0 : index
    %c0_66 = arith.constant 0 : index
    %c0_67 = arith.constant 0 : index
    %69 = vector.load %arg10[%c0_65, %c0_66, %c0_67] : memref<1x16x128xf32, #tpu.memory_space<vmem>>, vector<1x16x128xf32>
    tpu.vector_store %arg10[%c0_65, %c0_66, %c0_67], %68 {strides = array<i32>} : memref<1x16x128xf32, #tpu.memory_space<vmem>>, vector<1x16x128xf32>,
    return
  }
  func.func @transform_0(%arg0: i32) -> (i32, i32, i32) {
    %c0_i32 = arith.constant 0 : i32
    %c0_i32_0 = arith.constant 0 : i32
    %c0_i32_1 = arith.constant 0 : i32
    return %arg0, %c0_i32, %c0_i32_0 : i32, i32, i32
  }
  func.func @transform_1(%arg0: i32) -> (i32, i32, i32) {
    %c0_i32 = arith.constant 0 : i32
    %c0_i32_0 = arith.constant 0 : i32
    %c0_i32_1 = arith.constant 0 : i32
    %c0_i32_2 = arith.constant 0 : i32
    return %c0_i32, %c0_i32_0, %c0_i32_1 : i32, i32, i32
  }
  func.func @transform_2(%arg0: i32) -> (i32, i32) {
    %c0_i32 = arith.constant 0 : i32
    %c0_i32_0 = arith.constant 0 : i32
    %c0_i32_1 = arith.constant 0 : i32
    return %c0_i32, %c0_i32_0 : i32, i32
  }
  func.func @transform_3(%arg0: i32) -> (i32, i32) {
    %c0_i32 = arith.constant 0 : i32
    %c0_i32_0 = arith.constant 0 : i32
    %c0_i32_1 = arith.constant 0 : i32
    return %c0_i32, %c0_i32_0 : i32, i32
  }
  func.func @transform_4(%arg0: i32) -> (i32, i32) {
    %c0_i32 = arith.constant 0 : i32
    %c0_i32_0 = arith.constant 0 : i32
    %c0_i32_1 = arith.constant 0 : i32
    return %c0_i32, %c0_i32_0 : i32, i32
  }
  func.func @transform_5(%arg0: i32) -> (i32, i32, i32) {
    %c0_i32 = arith.constant 0 : i32
    %c0_i32_0 = arith.constant 0 : i32
    %c0_i32_1 = arith.constant 0 : i32
    %c0_i32_2 = arith.constant 0 : i32
    return %c0_i32, %c0_i32_0, %c0_i32_1 : i32, i32, i32
  }
  func.func @transform_6(%arg0: i32) -> (i32, i32) {
    %c0_i32 = arith.constant 0 : i32
    %c0_i32_0 = arith.constant 0 : i32
    %c0_i32_1 = arith.constant 0 : i32
    return %c0_i32, %c0_i32_0 : i32, i32
  }
  func.func @transform_7(%arg0: i32) -> (i32, i32) {
    %c0_i32 = arith.constant 0 : i32
    %c0_i32_0 = arith.constant 0 : i32
    %c0_i32_1 = arith.constant 0 : i32
    return %c0_i32, %c0_i32_0 : i32, i32
  }
  func.func @transform_8(%arg0: i32) -> (i32, i32) {
    %c0_i32 = arith.constant 0 : i32
    %c0_i32_0 = arith.constant 0 : i32
    %c0_i32_1 = arith.constant 0 : i32
    return %c0_i32, %c0_i32_0 : i32, i32
  }
  func.func @transform_9(%arg0: i32) -> (i32, i32, i32) {
    %c0_i32 = arith.constant 0 : i32
    %c0_i32_0 = arith.constant 0 : i32
    %c0_i32_1 = arith.constant 0 : i32
    return %arg0, %c0_i32, %c0_i32_0 : i32, i32, i32
  }
}

</mosaic_0001>

<bundles_post_ra>
// kernel: tpu_custom_call.1
= control target key start
LH: loop header
LB: loop body
LE: loop exit
PB: predicated region body
PF: predicated region fallthrough
CT: control target
= control target key end

     0   :  { %14 = vsyncpa [#allocation5], 0  ;;  %s2644_s0 = inlined_call_operand.hbm [shape: f32[2,16,256], index: 0, kind: input, shape index: {}]   ;;  %s2645_s1 = inlined_call_operand.hbm [shape: f32[3,256,128], index: 1, kind: input, shape index: {}]   ;;  %s2646_s2 = inlined_call_operand.vmem [shape: f32[1,128], index: 2, kind: input, shape index: {}]   ;;  %s2647_s3 = inlined_call_operand.vmem [shape: f32[128,64], index: 3, kind: input, shape index: {}]   ;;  %s2648_s4 = inlined_call_operand.vmem [shape: f32[1,64], index: 4, kind: input, shape index: {}]   ;;  %s2649_s5 = inlined_call_operand.vmem [shape: f32[3,64,64], index: 5, kind: input, shape index: {}]   ;;  %s2650_s6 = inlined_call_operand.vmem [shape: f32[1,64], index: 6, kind: input, shape index: {}]   ;;  %s2651_s7 = inlined_call_operand.hbm [shape: f32[64,128], index: 7, kind: input, shape index: {}]   ;;  %s2652_s8 = inlined_call_operand.vmem [shape: f32[1,128], index: 8, kind: input, shape index: {}]   ;;  %s2653_s9 = inlined_call_operand.hbm [shape: f32[2,16,128], index: 9, kind: output, shape index: {}]  }
   0x1   :  { %16 = vsyncpa [#allocation5 + $0x1], 0 }
   0x2   :  { %17 = vsyncpa [#allocation8], 0 }
   0x3   :  { %18 = vsyncpa [#allocation6], 0 }
   0x4   :  { %20 = vsyncpa [#allocation6 + $0x1], 0  ;;  %s2216_s30 = smov 0   ;;  %s2218_s10 = smov 0  }
   0x5   :  { %s2220_s11 = smov 0   ;;  %s2222_s12 = smov 0  }
   0x6 LB: > { %s2237_s13 = sadd.s32 4294967295, %s2153_s12   ;;  %s1396_s14 = sadd.s32 4294967294, %s2153_s12   ;;  %s2153_s12 = sphi %s2222_s12, %s2676_s12   ;;  %s2149_s11 = sphi %s2220_s11, %s2675_s11   ;;  %s2145_s10 = sphi %s2218_s10, %s2674_s10   ;;  %s2141_s30 = sphi %s2216_s30, %s2673_s30  }
   0x7   : > { %p46_p0 = scmp.ne.s32.totalorder %s2145_s10, %s2141_s30  ;;  %p2654_p1 = scmp.eq.s32.totalorder %s2237_s13, 0 }
   0x8   : > { %p244_p3 = scmp.eq.s32.totalorder %s1396_s14, 1  ;;  %p1397_p5 = scmp.ge.s32.totalorder %s2153_s12, 1 }
   0x9   : > { %p2246_p4 = por %p2654_p1, %p46_p0  ;;  %p251_p7 = scmp.lt.s32.totalorder %s2153_s12, 3 }
   0xa   : > { %p2251_p6 = por %p244_p3, %p46_p0  ;;  %s2155_s18 = smov [#allocation7]  }
   0xb   : > { %s2658_s15 = scalar_select %p2246_p4, 1, 0 }
   0xc   : > { %s2659_s16 = scalar_select %p2251_p6, 1, 0 }
   0xd   : > { %p2256_p8 = pnand %p1397_p5, %p251_p7  ;;  %s263_s19 = sshll.u32 %s2155_s18, 4  ;;  %s2260_s19 = int_to_ptr.vmem [resolvable:$true] %s263_s19 }
   0xe   : > { %2660 = sst [smem:[#allocation14_spill]] %s2659_s16  ;;  %s2156_s21 = smov [#allocation9]  }
   0xf   : > { %p1935_p9 = pneg %p2256_p8  ;;  %s291_s22 = sshll.u32 %s2156_s21, 4  ;;  %s2271_s22 = int_to_ptr.vmem [resolvable:$true] %s291_s22 }
  0x10   : > { %s1997_s25 = scalar_lea.hbm %s2645_s1, 12288 }
  0x11   : > { %p2267_p11 = pnand %p1935_p9, %p2654_p1  ;;  %p1998_p12 = scmp.ne.s32.totalorder %s2645_s1, %s1997_s25 }
  0x12   : > { %p2004_p5 = scmp.lt.u32.totalorder %s1997_s25, %s2645_s1 }
  0x13   : > { %p1999_p13 = pneg %p2267_p11 }
  0x15   : > { %p2000_p0 = pnand %p1999_p13, %p1998_p12 }
  0x17   : > { %p2001_p3 = pneg %p2000_p0 }
  0x19   : > { %p2006_p7 = pnand %p2004_p5, %p2001_p3 }
  0x1b   : > { %2009 = shalt.err (!%p2006_p7)
}
  0x1c   : > { %s2010_s14 = scalar_lea.vmem %s2260_s19, 12288  ;;  %p2018_p2 = scmp.lt.s32.totalorder %s2260_s19, %s2260_s19 }
  0x1d   : > { %p2011_p9 = scmp.ne.s32.totalorder %s2260_s19, %s2010_s14  ;;  %p2019_p12 = scmp.lt.s32.totalorder %s2010_s14, %s2010_s14 }
  0x1f   : > { %p2013_p10 = pnand %p2011_p9, %p1999_p13  ;;  %p2020_p0 = por %p2019_p12, %p2018_p2 }
  0x21   : > { %p2014_p1 = pneg %p2013_p10 }
  0x23   : > { %p2021_p6 = pnand %p2020_p0, %p2014_p1 }
  0x25   : > { %2024 = shalt.err (!%p2021_p6)
}
  0x26   : > { %s2157_s18 = smov 128   ;;  %s2158_s21 = smov 8  }
  0x27   : > { %1938 = dma.hbm_to_vmem [thread:$0]  (!%p2267_p11), %s2645_s1, 12288, %s2260_s19, [#allocation8], %s2157_s18, %s2157_s18, %s2158_s21  }
  0x28   : > { %s2025_s27 = scalar_lea.hbm %s2651_s7, 1024 }
  0x29   : > { %p2026_p2 = scmp.ne.s32.totalorder %s2651_s7, %s2025_s27  ;;  %p2032_p10 = scmp.lt.u32.totalorder %s2025_s27, %s2651_s7 }
  0x2b   : > { %p2028_p1 = pnand %p2026_p2, %p1999_p13 }
  0x2d   : > { %p2029_p6 = pneg %p2028_p1 }
  0x2f   : > { %p2034_p3 = pnand %p2032_p10, %p2029_p6 }
  0x31   : > { %2037 = shalt.err (!%p2034_p3)
}
  0x32   : > { %s2038_s19 = scalar_lea.vmem %s2271_s22, 1024  ;;  %p2046_p12 = scmp.lt.s32.totalorder %s2271_s22, %s2271_s22 }
  0x33   : > { %p2039_p5 = scmp.ne.s32.totalorder %s2271_s22, %s2038_s19  ;;  %p2047_p0 = scmp.lt.s32.totalorder %s2038_s19, %s2038_s19 }
  0x35   : > { %p2041_p7 = pnand %p2039_p5, %p1999_p13  ;;  %p2048_p2 = por %p2047_p0, %p2046_p12 }
  0x37   : > { %p2042_p9 = pneg %p2041_p7 }
  0x39   : > { %p2049_p1 = pnand %p2048_p2, %p2042_p9 }
  0x3b   : > { %2052 = shalt.err (!%p2049_p1)
}
  0x3c   : > { %1941 = dma.hbm_to_vmem [thread:$0]  (!%p2267_p11), %s2651_s7, 1024, %s2271_s22, [#allocation8], %s2157_s18, %s2157_s18, %s2158_s21  }
  0x3d   : > { %s2326_s24 = sadd.s32 1, %s2153_s12   ;;  %s33_s20 = sadd.s32 1, %s2149_s11 }
  0x3e   : > { %s30_s25 = ssub.s32 %s2153_s12, %s2326_s24  ;;  %p40_p13 = scmp.ne.s32.totalorder %s2149_s11, %s2145_s10 }
  0x3f   : > { %p31_p6 = scmp.eq.s32.totalorder %s30_s25, 0  ;;  %p41_p10 = scmp.eq.s32.totalorder %s2153_s12, 0 }
  0x40   : > { %p2663_p3 = scmp.eq.s32.totalorder %s2237_s13, 1  ;;  %p1952_p7 = scmp.lt.s32.totalorder %s2153_s12, 2 }
  0x41   : > { %s2342_s27 = scalar_select %p31_p6, %s2149_s11, %s33_s20  }
  0x42   : > { %p2336_p5 = por %p2663_p3, %p40_p13  ;;  %p42_p9 = por %p41_p10, %p40_p13 }
  0x43   : > { %s308_s28 = sand.u32 1, %s2149_s11   ;;  %s1442_s22 = sshll.u32 %s2153_s12, 9 }
  0x44   : > { %s2664_s26 = scalar_select %p2336_p5, 1, 0 }
  0x45   : > { %s1401_s29 = sshll.u32 %s308_s28, 5  ;;  %s2349_s14 = scalar_lea.hbm %s2644_s0, %s1442_s22 }
  0x46   : > { %s312_s19 = scalar_lea.vmem [#allocation4], %s1401_s29  ;;  %p2353_p11 = pnand %p1952_p7, %p42_p9 }
  0x47   : > { %s319_s16 = sshll.u32 %s312_s19, 4  ;;  %s2357_s20 = scalar_lea.sflag [#allocation5], %s308_s28  ;;  %s2351_s16 = int_to_ptr.vmem [resolvable:$true] %s319_s16 }
  0x48   : > { %s2053_s25 = scalar_lea.hbm %s2349_s14, 512  ;;  %p2055_p0 = pneg %p2353_p11 }
  0x49   : > { %p2054_p12 = scmp.ne.s32.totalorder %s2349_s14, %s2053_s25  ;;  %s2058_s18 = scalar_lea.hbm %s2644_s0, 1024 }
  0x4a   : > { %p2059_p13 = scmp.lt.u32.totalorder %s2349_s14, %s2644_s0  ;;  %p2060_p6 = scmp.lt.u32.totalorder %s2058_s18, %s2053_s25 }
  0x4b   : > { %p2056_p2 = pnand %p2055_p0, %p2054_p12  ;;  %p2062_p3 = scmp.lt.u32.totalorder %s2053_s25, %s2349_s14 }
  0x4c   : > { %p2061_p10 = por %p2060_p6, %p2059_p13 }
  0x4d   : > { %p2057_p1 = pneg %p2056_p2 }
  0x4e   : > { %p2063_p7 = por %p2062_p3, %p2061_p10 }
  0x50   : > { %p2064_p9 = pnand %p2063_p7, %p2057_p1 }
  0x52   : > { %2067 = shalt.err (!%p2064_p9)
}
  0x53   : > { %s2068_s28 = scalar_lea.vmem %s2351_s16, 512  ;;  %s2159_s29 = smov [#allocation4]  }
  0x54   : > { %p2069_p12 = scmp.ne.s32.totalorder %s2351_s16, %s2068_s28  ;;  %s2073_s22 = sshll.u32 %s2159_s29, 4  ;;  %s2074_s22 = int_to_ptr.vmem [resolvable:$false] %s2073_s22 }
  0x55   : > { %s2075_s21 = scalar_lea.vmem %s2074_s22, 1024  ;;  %p2076_p4 = scmp.lt.s32.totalorder %s2351_s16, %s2074_s22 }
  0x56   : > { %p2071_p2 = pnand %p2069_p12, %p2055_p0  ;;  %p2077_p13 = scmp.lt.s32.totalorder %s2075_s21, %s2068_s28 }
  0x58   : > { %p2072_p5 = pneg %p2071_p2  ;;  %p2078_p6 = por %p2077_p13, %p2076_p4 }
  0x5a   : > { %p2079_p10 = pnand %p2078_p6, %p2072_p5 }
  0x5c   : > { %2082 = shalt.err (!%p2079_p10)
}
  0x5d   : > { %s2160_s25 = smov 256   ;;  %s2161_s18 = smov 16  }
  0x5e   : > { %1945 = dma.hbm_to_vmem [thread:$0]  (!%p2353_p11), %s2349_s14, 512, %s2351_s16, %s2357_s20, %s2160_s25, %s2160_s25, %s2161_s18  }
  0x5f   : > { %331 = sbr.rel (%p2256_p8) target bundleno = 1091 (0x443), region = 56  ;;  %s2388_s19 = sand.u32 (!%p2256_p8), 1, %s2145_s10  }
  0x60   : > { %s1405_s28 = sshll.u32 (!%p2256_p8), %s2388_s19, 5  ;;  %s334_s29 = scalar_lea.sflag (!%p2256_p8), [#allocation5], %s2388_s19 }
  0x61   : > { %s2392_s22 = scalar_lea.vmem (!%p2256_p8), [#allocation4], %s1405_s28  ;;  %p2666_p4 = scmp.ne.s32.totalorder (!%p2256_p8), %s2658_s15, 0 }
  0x66   : > { %2128 = dma.done.wait (%p2666_p4), %s334_s29, 512  }
  0x67   : > { %2130 = vsyncadd (%p2666_p4), %s334_s29, 4294966784  ;;  %p2667_p5 = scmp.eq.s32.totalorder %s2237_s13, 0 }
  0x69   : > { %2132 = dma.done.wait (%p2667_p5), [#allocation8], 13312   ;;  %p2668_p8 = pmov %p2667_p5 }
  0x6a   : > { %v380_v0 = vlaneseq  ;;  %v2162_v1 = vmov 0.0   ;;  %v474_v2 = vld [vmem:[#allocation7 + $0x180] sm:$0xff]  ;;  %v475_v3 = vld [vmem:[#allocation7 + $0x188] sm:$0xff]  ;;  %v476_v13 = vld [vmem:[#allocation7 + $0x190] sm:$0xff]  ;;  %vm400_vm1 = vcmask 1040384   ;;  %vm496_vm2 = vcmask 1046528  }
  0x6b   : > { %2134 = vsyncadd (%p2668_p8), [#allocation8], 4294953984  ;;  %v441_v4 = vld [vmem:[#allocation7 + $0x80] sm:$0xff]  ;;  %v1727_v5 = vpack.c.bf16 %v475_v3, %v474_v2  ;;  %v442_v6 = vld [vmem:[#allocation7 + $0x88] sm:$0xff]  ;;  %vm694_vm3 = vcmask 1045504   ;;  %vm389_vm4 = vcmask 516096  }
  0x6c   : > { %vm382_vm0 = vcmp.lt.s32.totalorder %v380_v0, 256  ;;  %v458_v7 = vld [vmem:[#allocation7 + $0x100] sm:$0xff]  ;;  %v459_v8 = vld [vmem:[#allocation7 + $0x108] sm:$0xff]  ;;  %v1759_v9 = vpack.c.bf16 %v442_v6, %v441_v4  ;;  %v477_v15 = vld [vmem:[#allocation7 + $0x198] sm:$0xff]  ;;  %390 = vst.msk [vmem:[#allocation3] sm:$0x1] %vm389_vm4, %v2162_v1 }
  0x6d   : > { %384 = vst.msk [vmem:[#allocation2] ss:$8 sm:$0x3] %vm382_vm0, %v2162_v1  ;;  %387 = vst.msk [vmem:[#allocation2 + $0x21] ss:$8 sm:$0x3] %vm382_vm0, %v2162_v1  ;;  %v1729_v10 = vpack.c.bf16 %v459_v8, %v458_v7  ;;  %1728 = vmatprep.subr.bf16.mxu0 %v1727_v5  ;;  %v1731_v18 = vpack.c.bf16 %v477_v15, %v476_v13 }
  0x6e   : > { %v425_v11 = vld [vmem:[#allocation7] sm:$0xff]  ;;  %v426_v12 = vld [vmem:[#allocation7 + $0x8] sm:$0xff]  ;;  %v443_v16 = vld [vmem:[#allocation7 + $0x90] sm:$0xff]  ;;  %1760 = vmatprep.subr.bf16.mxu1 %v1759_v9  ;;  %391 = vst.msk [vmem:[#allocation3 + $0x11] sm:$0x1] %vm389_vm4, %v2162_v1  ;;  %vm897_vm5 = vcmask 523264  }
  0x6f   : > { %v1761_v14 = vpack.c.bf16 %v426_v12, %v425_v11  ;;  %v444_v17 = vld [vmem:[#allocation7 + $0x98] sm:$0xff]  ;;  %1730 = vmatpush3.bf16.msra.mxu0 %v1729_v10  ;;  %v460_v20 = vld [vmem:[#allocation7 + $0x110] sm:$0xff]  ;;  %v478_v25 = vld [vmem:[#allocation7 + $0x1a0] sm:$0xff]  ;;  %s1408_s14 = sshll.u32 %s2388_s19, 4  ;;  %s1443_s25 = sshll.u32 %s2237_s13, 8 }
  0x70   : > { %v1763_v19 = vpack.c.bf16 %v444_v17, %v443_v16  ;;  %v461_v21 = vld [vmem:[#allocation7 + $0x118] sm:$0xff]  ;;  %v427_v22 = vld [vmem:[#allocation7 + $0x10] sm:$0xff]  ;;  %v479_v26 = vld [vmem:[#allocation7 + $0x1a8] sm:$0xff]  ;;  %1732 = vmatprep.subr.bf16.mxu0 %v1731_v18  ;;  %s379_s16 = scalar_lea.vmem [#allocation10], %s1408_s14  ;;  %s2600_s29 = scalar_lea.hbm %s2653_s9, %s1443_s25 }
  0x71   : > { %1762 = vmatpush3.bf16.msra.mxu1 %v1761_v14  ;;  %v1733_v23 = vpack.c.bf16 %v461_v21, %v460_v20  ;;  %v428_v24 = vld [vmem:[#allocation7 + $0x18] sm:$0xff]  ;;  %v1735_v28 = vpack.c.bf16 %v479_v26, %v478_v25  ;;  %v445_v29 = vld [vmem:[#allocation7 + $0xa0] sm:$0xff]  ;;  %v446_v30 = vld [vmem:[#allocation7 + $0xa8] sm:$0xff]  ;;  %s1304_s23 = sshll.u32 %s379_s16, 4  ;;  %p2669_p0 = scmp.ne.s32.totalorder %s2664_s26, 0  ;;  %s2595_s23 = int_to_ptr.vmem [resolvable:$true] %s1304_s23 }
  0x72   : > { %1764 = vmatprep.subr.bf16.mxu1 %v1763_v19  ;;  %v1765_v27 = vpack.c.bf16 %v428_v24, %v427_v22  ;;  %v462_v31 = vld [vmem:[#allocation7 + $0x120] sm:$0xff]  ;;  %v1767_v32 = vpack.c.bf16 %v446_v30, %v445_v29  ;;  %v463_v33 = vld [vmem:[#allocation7 + $0x128] sm:$0xff]  ;;  %v480_v37 = vld [vmem:[#allocation7 + $0x1b0] sm:$0xff]  ;;  %s2083_s15 = scalar_lea.vmem %s2595_s23, 256  ;;  %s2163_s13 = smov [#allocation10]  }
  0x73   : > { %v429_v34 = vld [vmem:[#allocation7 + $0x20] sm:$0xff]  ;;  %v430_v35 = vld [vmem:[#allocation7 + $0x28] sm:$0xff]  ;;  %1734 = vmatpush3.bf16.msra.mxu0 %v1733_v23  ;;  %v1737_v36 = vpack.c.bf16 %v463_v33, %v462_v31  ;;  %v481_v38 = vld [vmem:[#allocation7 + $0x1b8] sm:$0xff]  ;;  %p2084_p11 = scmp.ne.s32.totalorder %s2595_s23, %s2083_s15  ;;  %s2087_s17 = sshll.u32 %s2163_s13, 4  ;;  %s2088_s17 = int_to_ptr.vmem [resolvable:$false] %s2087_s17 }
  0x74   : > { %v447_v39 = vld [vmem:[#allocation7 + $0xb0] sm:$0xff]  ;;  %1736 = vmatprep.subr.bf16.mxu0 %v1735_v28  ;;  %v1769_v40 = vpack.c.bf16 %v430_v35, %v429_v34  ;;  %v1739_v41 = vpack.c.bf16 %v481_v38, %v480_v37  ;;  %v448_v42 = vld [vmem:[#allocation7 + $0xb8] sm:$0xff]  ;;  %v482_v48 = vld [vmem:[#allocation7 + $0x1c0] sm:$0xff]  ;;  %s2089_s14 = scalar_lea.vmem %s2088_s17, 512  ;;  %p2090_p7 = scmp.lt.s32.totalorder %s2595_s23, %s2088_s17 }
  0x75   : > { %1766 = vmatpush3.bf16.msra.mxu1 %v1765_v27  ;;  %v464_v43 = vld [vmem:[#allocation7 + $0x130] sm:$0xff]  ;;  %v465_v44 = vld [vmem:[#allocation7 + $0x138] sm:$0xff]  ;;  %v1771_v45 = vpack.c.bf16 %v448_v42, %v447_v39  ;;  %v483_v49 = vld [vmem:[#allocation7 + $0x1c8] sm:$0xff]  ;;  %p2085_p1 = pnand %p2084_p11, %p2669_p0  ;;  %p2091_p9 = scmp.lt.s32.totalorder %s2089_s14, %s2083_s15 }
  0x76   : > { %1768 = vmatprep.subr.bf16.mxu1 %v1767_v32  ;;  %v431_v46 = vld [vmem:[#allocation7 + $0x30] sm:$0xff]  ;;  %v432_v47 = vld [vmem:[#allocation7 + $0x38] sm:$0xff]  ;;  %v449_v50 = vld [vmem:[#allocation7 + $0xc0] sm:$0xff]  ;;  %v1741_v52 = vpack.c.bf16 %v465_v44, %v464_v43  ;;  %v1743_v54 = vpack.c.bf16 %v483_v49, %v482_v48 }
  0x77   : > { %v450_v51 = vld [vmem:[#allocation7 + $0xc8] sm:$0xff]  ;;  %1738 = vmatpush3.bf16.msra.mxu0 %v1737_v36  ;;  %v1773_v53 = vpack.c.bf16 %v432_v47, %v431_v46  ;;  %v466_v55 = vld [vmem:[#allocation7 + $0x140] sm:$0xff]  ;;  %v484_v60 = vld [vmem:[#allocation7 + $0x1d0] sm:$0xff]  ;;  %p2086_p3 = pneg %p2085_p1  ;;  %p2092_p12 = por %p2091_p9, %p2090_p7 }
  0x78   : > { %1740 = vmatprep.subr.bf16.mxu0 %v1739_v41  ;;  %v467_v56 = vld [vmem:[#allocation7 + $0x148] sm:$0xff]  ;;  %v433_v57 = vld [vmem:[#allocation7 + $0x40] sm:$0xff]  ;;  %v1775_v58 = vpack.c.bf16 %v450_v51, %v449_v50  ;;  %v485_v61 = vld [vmem:[#allocation7 + $0x1d8] sm:$0xff] }
  0x79   : > { %1770 = vmatpush3.bf16.msra.mxu1 %v1769_v40  ;;  %v434_v59 = vld [vmem:[#allocation7 + $0x48] sm:$0xff]  ;;  %v451_v62 = vld [vmem:[#allocation7 + $0xd0] sm:$0xff]  ;;  %v452_v63 = vld [vmem:[#allocation7 + $0xd8] sm:$0xff]  ;;  %v1745_v0 = vpack.c.bf16 %v467_v56, %v466_v55  ;;  %v1747_v3 = vpack.c.bf16 %v485_v61, %v484_v60  ;;  %p2093_p2 = pnand %p2092_p12, %p2086_p3 }
  0x7a   : > { %1772 = vmatprep.subr.bf16.mxu1 %v1771_v45  ;;  %v1777_v2 = vpack.c.bf16 %v434_v59, %v433_v57  ;;  %v468_v4 = vld [vmem:[#allocation7 + $0x150] sm:$0xff]  ;;  %v469_v5 = vld [vmem:[#allocation7 + $0x158] sm:$0xff]  ;;  %v1779_v7 = vpack.c.bf16 %v452_v63, %v451_v62  ;;  %v486_v9 = vld [vmem:[#allocation7 + $0x1e0] sm:$0xff] }
  0x7b   : > { %1742 = vmatpush3.bf16.msra.mxu0 %v1741_v52  ;;  %v435_v6 = vld [vmem:[#allocation7 + $0x50] sm:$0xff]  ;;  %v436_v8 = vld [vmem:[#allocation7 + $0x58] sm:$0xff]  ;;  %v487_v10 = vld [vmem:[#allocation7 + $0x1e8] sm:$0xff]  ;;  %v1749_v14 = vpack.c.bf16 %v469_v5, %v468_v4 }
  0x7c   : > { %1744 = vmatprep.subr.bf16.mxu0 %v1743_v54  ;;  %v453_v11 = vld [vmem:[#allocation7 + $0xe0] sm:$0xff]  ;;  %v454_v12 = vld [vmem:[#allocation7 + $0xe8] sm:$0xff]  ;;  %v1781_v18 = vpack.c.bf16 %v436_v8, %v435_v6  ;;  %v1751_v19 = vpack.c.bf16 %v487_v10, %v486_v9  ;;  %v488_v20 = vld [vmem:[#allocation7 + $0x1f0] sm:$0xff] }
  0x7d   : > { %1774 = vmatpush3.bf16.msra.mxu1 %v1773_v53  ;;  %v470_v13 = vld [vmem:[#allocation7 + $0x160] sm:$0xff]  ;;  %v471_v15 = vld [vmem:[#allocation7 + $0x168] sm:$0xff]  ;;  %v395_v22 = vld [vmem:[%s2392_s22 + $0x18] sm:$0xff]  ;;  %v1783_v23 = vpack.c.bf16 %v454_v12, %v453_v11 }
  0x7e   : > { %1776 = vmatprep.subr.bf16.mxu1 %v1775_v58  ;;  %v437_v16 = vld [vmem:[#allocation7 + $0x60] sm:$0xff]  ;;  %v438_v17 = vld [vmem:[#allocation7 + $0x68] sm:$0xff]  ;;  %v489_v24 = vld [vmem:[#allocation7 + $0x1f8] sm:$0xff]  ;;  %v405_v26 = vrot.slane %v395_v22, 7  ;;  %v1753_v33 = vpack.c.bf16 %v471_v15, %v470_v13 }
  0x7f   : > { %1746 = vmatpush3.bf16.msra.mxu0 %v1745_v0  ;;  %v393_v21 = vld [vmem:[%s2392_s22 + $0x8] sm:$0xff]  ;;  %v392_v27 = vld [vmem:[%s2392_s22] sm:$0xff]  ;;  %v394_v28 = vld [vmem:[%s2392_s22 + $0x10] sm:$0xff]  ;;  %v1785_v35 = vpack.c.bf16 %v438_v17, %v437_v16  ;;  %v1755_v36 = vpack.c.bf16 %v489_v24, %v488_v20  ;;  %s1291_s22 = scalar_lea.sflag [#allocation6], %s2388_s19 }
  0x80   : > { %1748 = vmatprep.subr.bf16.mxu0 %v1747_v3  ;;  %v402_v25 = vrot.slane %v393_v21, 7  ;;  %v455_v29 = vld [vmem:[#allocation7 + $0xf0] sm:$0xff]  ;;  %v456_v30 = vld [vmem:[#allocation7 + $0xf8] sm:$0xff]  ;;  %v401_v31 = vrot.slane %v392_v27, 7  ;;  %v403_v32 = vrot.slane %v394_v28, 7  ;;  %v678_v43 = vld [vmem:[#allocation7 + $0x280] sm:$0xff] }
  0x81   : > { %1778 = vmatpush3.bf16.msra.mxu1 %v1777_v2  ;;  %418 = vst [vmem:[#allocation2 + $0x28] sm:$0x1] %v405_v26  ;;  %v472_v37 = vld [vmem:[#allocation7 + $0x170] sm:$0xff]  ;;  %v473_v38 = vld [vmem:[#allocation7 + $0x178] sm:$0xff]  ;;  %v1787_v41 = vpack.c.bf16 %v456_v30, %v455_v29  ;;  %v679_v44 = vld [vmem:[#allocation7 + $0x288] sm:$0xff] }
  0x82   : > { %1780 = vmatprep.subr.bf16.mxu1 %v1779_v7  ;;  %v2409_v34 = vsel %vm400_vm1, %v402_v25, %v405_v26  ;;  %414 = vst [vmem:[#allocation2 + $0x8] sm:$0xfe] %v402_v25  ;;  %v439_v39 = vld [vmem:[#allocation7 + $0x70] sm:$0xff]  ;;  %v2412_v40 = vsel %vm400_vm1, %v401_v31, %v403_v32  ;;  %413 = vst [vmem:[#allocation2] sm:$0xfe] %v401_v31  ;;  %v440_v42 = vld [vmem:[#allocation7 + $0x78] sm:$0xff]  ;;  %v1757_v45 = vpack.c.bf16 %v473_v38, %v472_v37 }
  0x83   : > { %1750 = vmatpush3.bf16.msra.mxu0 %v1749_v14  ;;  %417 = vst [vmem:[#allocation2 + $0x20] sm:$0x1] %v403_v32  ;;  %v1789_v46 = vpack.c.bf16 %v440_v42, %v439_v39  ;;  %v1791_v47 = vpack.c.bf16 %v679_v44, %v678_v43  ;;  %v662_v48 = vld [vmem:[#allocation7 + $0x200] sm:$0xff]  ;;  %v501_v49 = vrot.slane %v2409_v34, 1  ;;  %v663_v50 = vld [vmem:[#allocation7 + $0x208] sm:$0xff]  ;;  %v680_v51 = vld [vmem:[#allocation7 + $0x290] sm:$0xff] }
  0x84   : > { %1752 = vmatprep.subr.bf16.mxu0 %v1751_v19  ;;  %v681_v52 = vld [vmem:[#allocation7 + $0x298] sm:$0xff]  ;;  %v498_v54 = vrot.slane %v2412_v40, 1  ;;  %v1793_v59 = vpack.c.bf16 %v663_v50, %v662_v48  ;;  %v664_v0 = vld [vmem:[#allocation7 + $0x210] sm:$0xff]  ;;  %v699_v5 = vrot.slane %v2409_v34, 2  ;;  %v682_v7 = vld [vmem:[#allocation7 + $0x2a0] sm:$0xff]  ;;  %v696_v50 = vrot.slane %v2412_v40, 2 }
  0x85   : > { %1782 = vmatpush3.bf16.msra.mxu1 %v1781_v18  ;;  %v1795_v60 = vpack.c.bf16 %v681_v52, %v680_v51  ;;  %v665_v2 = vld [vmem:[#allocation7 + $0x218] sm:$0xff]  ;;  %v683_v8 = vld [vmem:[#allocation7 + $0x2a8] sm:$0xff]  ;;  %v666_v13 = vld [vmem:[#allocation7 + $0x220] sm:$0xff] }
  0x86   : > { %1784 = vmatprep.subr.bf16.mxu1 %v1783_v23  ;;  %v1797_v10 = vpack.c.bf16 %v665_v2, %v664_v0  ;;  %v1799_v12 = vpack.c.bf16 %v683_v8, %v682_v7  ;;  %v667_v14 = vld [vmem:[#allocation7 + $0x228] sm:$0xff]  ;;  %v684_v16 = vld [vmem:[#allocation7 + $0x2b0] sm:$0xff]  ;;  %v685_v17 = vld [vmem:[#allocation7 + $0x2b8] sm:$0xff] }
  0x87   : > { %1754 = vmatpush3.bf16.msra.mxu0 %v1753_v33  ;;  %v1801_v18 = vpack.c.bf16 %v667_v14, %v666_v13  ;;  %v1803_v19 = vpack.c.bf16 %v685_v17, %v684_v16  ;;  %v668_v20 = vld [vmem:[#allocation7 + $0x230] sm:$0xff]  ;;  %v669_v21 = vld [vmem:[#allocation7 + $0x238] sm:$0xff]  ;;  %v686_v22 = vld [vmem:[#allocation7 + $0x2c0] sm:$0xff] }
  0x88   : > { %1756 = vmatprep.subr.bf16.mxu0 %v1755_v36  ;;  %v2418_v57 = vld [vmem:[#allocation2 + $0x28] sm:$0x3]  ;;  %v687_v23 = vld [vmem:[#allocation7 + $0x2c8] sm:$0xff]  ;;  %v1805_v24 = vpack.c.bf16 %v669_v21, %v668_v20  ;;  %v688_v28 = vld [vmem:[#allocation7 + $0x2d0] sm:$0xff] }
  0x89   : > { %1786 = vmatpush3.bf16.msra.mxu1 %v1785_v35  ;;  %v420_v53 = vld [vmem:[#allocation2 + $0x8] sm:$0xff]  ;;  %v2416_v56 = vld [vmem:[#allocation2] sm:$0xff]  ;;  %v505_v61 = vrot.slane %v2418_v57, 1  ;;  %v1807_v25 = vpack.c.bf16 %v687_v23, %v686_v22  ;;  %v671_v27 = vld [vmem:[#allocation7 + $0x248] sm:$0xff]  ;;  %v703_v51 = vrot.slane %v2418_v57, 2 }
  0x8a   : > { %1788 = vmatprep.subr.bf16.mxu1 %v1787_v41  ;;  %v500_v55 = vrot.slane %v420_v53, 1  ;;  %650 = vmatprep.mubr.f32.mxu1 %v420_v53  ;;  %v497_v58 = vrot.slane %v2416_v56, 1  ;;  %v2422_v62 = vld [vmem:[#allocation2 + $0x20] sm:$0x3]  ;;  %v698_v4 = vrot.slane %v420_v53, 2  ;;  %v670_v26 = vld [vmem:[#allocation7 + $0x240] sm:$0xff] }
  0x8b   : > { %1758 = vmatpush3.bf16.msra.mxu0 %v1757_v45  ;;  %v503_v3 = vrot.slane %v2422_v62, 1  ;;  %v506_v9 = vsel %vm496_vm2, %v501_v49, %v505_v61  ;;  %v689_v29 = vld [vmem:[#allocation7 + $0x2d8] sm:$0xff]  ;;  %v1809_v30 = vpack.c.bf16 %v671_v27, %v670_v26  ;;  %v672_v32 = vld [vmem:[#allocation7 + $0x250] sm:$0xff]  ;;  %v690_v35 = vld [vmem:[#allocation7 + $0x2e0] sm:$0xff]  ;;  %v701_v53 = vrot.slane %v2422_v62, 2 }
  0x8c   : > { %1792 = vmatprep.subr.bf16.mxu0 %v1791_v47  ;;  %v502_v63 = vsel %vm496_vm2, %v500_v55, %v501_v49  ;;  %v499_v6 = vsel %vm496_vm2, %v497_v58, %v498_v54  ;;  %v700_v15 = vsel %vm694_vm3, %v698_v4, %v699_v5  ;;  %v1811_v31 = vpack.c.bf16 %v689_v29, %v688_v28  ;;  %v673_v33 = vld [vmem:[#allocation7 + $0x258] sm:$0xff]  ;;  %v691_v36 = vld [vmem:[#allocation7 + $0x2e8] sm:$0xff]  ;;  %v674_v39 = vld [vmem:[#allocation7 + $0x260] sm:$0xff] }
  0x8d   : > { %1790 = vmatpush3.bf16.msra.mxu1 %v1789_v46  ;;  %575 = vmatprep.mubr.f32.mxu0 %v502_v63  ;;  %v504_v11 = vsel %vm496_vm2, %v498_v54, %v503_v3  ;;  %v1813_v37 = vpack.c.bf16 %v673_v33, %v672_v32  ;;  %v1815_v38 = vpack.c.bf16 %v691_v36, %v690_v35  ;;  %v675_v41 = vld [vmem:[#allocation7 + $0x268] sm:$0xff]  ;;  %v692_v42 = vld [vmem:[#allocation7 + $0x2f0] sm:$0xff]  ;;  %v693_v43 = vld [vmem:[#allocation7 + $0x2f8] sm:$0xff]  ;;  %v695_v49 = vrot.slane %v2416_v56, 2 }
  0x8e   : > { %576 = vmatmul.mubr.f32.vlgmr.msra.gmra.mrb[0].mxu0 %v499_v6  ;;  %v1817_v44 = vpack.c.bf16 %v675_v41, %v674_v39  ;;  %v1819_v45 = vpack.c.bf16 %v693_v43, %v692_v42  ;;  %v676_v46 = vld [vmem:[#allocation7 + $0x270] sm:$0xff]  ;;  %v677_v47 = vld [vmem:[#allocation7 + $0x278] sm:$0xff]  ;;  %v704_v54 = vsel %vm694_vm3, %v699_v5, %v703_v51  ;;  %v702_v55 = vsel %vm694_vm3, %v696_v50, %v701_v53  ;;  %v799_v57 = vld [vmem:[%s2647_s3 + $0x10] sm:$0xff] }
  0x8f   : > { %1794 = vmatpush3.bf16.msra.mxu0 %v1793_v59  ;;  %580 = vmatprep.mubr.f32.mxu0 %v506_v9  ;;  %v1821_v48 = vpack.c.bf16 %v677_v47, %v676_v46  ;;  %v697_v52 = vsel %vm694_vm3, %v695_v49, %v696_v50  ;;  %v800_v58 = vld [vmem:[%s2647_s3 + $0x18] sm:$0xff]  ;;  %v802_v61 = vld [vmem:[%s2647_s3 + $0x28] sm:$0xff]  ;;  %v803_v63 = vld [vmem:[%s2647_s3 + $0x30] sm:$0xff] }
  0x90   : > { %651 = vmatmul.mubr.f32.vlgmr.msra.gmra.mrb[0].mxu1 %v2416_v56  ;;  %1796 = vmatprep.subr.bf16.mxu0 %v1795_v60  ;;  %v798_v56 = vld [vmem:[%s2647_s3 + $0x8] sm:$0xff]  ;;  %v1827_v59 = vpack.c.bf16 %v800_v58, %v799_v57  ;;  %v801_v60 = vld [vmem:[%s2647_s3 + $0x20] sm:$0xff]  ;;  %v804_v0 = vld [vmem:[%s2647_s3 + $0x38] sm:$0xff] }
  0x91   : > { %655 = vmatprep.mubr.f32.mxu1 %v2409_v34  ;;  %v1831_v62 = vpack.c.bf16 %v802_v61, %v801_v60  ;;  %v1835_v2 = vpack.c.bf16 %v804_v0, %v803_v63  ;;  %v805_v3 = vld [vmem:[%s2647_s3 + $0x40] sm:$0xff]  ;;  %v806_v4 = vld [vmem:[%s2647_s3 + $0x48] sm:$0xff]  ;;  %v807_v6 = vld [vmem:[%s2647_s3 + $0x50] sm:$0xff] }
  0x92   : > { %581 = vmatmul.mubr.f32.gmra.mrb[2].mxu0 %v504_v11  ;;  %v1839_v5 = vpack.c.bf16 %v806_v4, %v805_v3  ;;  %v808_v7 = vld [vmem:[%s2647_s3 + $0x58] sm:$0xff]  ;;  %v809_v9 = vld [vmem:[%s2647_s3 + $0x60] sm:$0xff]  ;;  %v904_v16 = vld [vmem:[%s2649_s5 + $0x8] sm:$0xff] }
  0x93   : > { %1798 = vmatpush3.bf16.msra.mxu0 %v1797_v10  ;;  %773 = vmatprep.mubr.f32.mxu0 %v700_v15  ;;  %v1843_v8 = vpack.c.bf16 %v808_v7, %v807_v6  ;;  %v810_v10 = vld [vmem:[%s2647_s3 + $0x68] sm:$0xff]  ;;  %v812_v13 = vld [vmem:[%s2647_s3 + $0x78] sm:$0xff]  ;;  %v903_v15 = vld [vmem:[%s2649_s5] sm:$0xff] }
  0x94   : > { %656 = vmatmul.mubr.f32.gmra.mrb[2].mxu1 %v2412_v40  ;;  %1800 = vmatprep.subr.bf16.mxu0 %v1799_v12  ;;  %v797_v40 = vld [vmem:[%s2647_s3] sm:$0xff]  ;;  %v1847_v11 = vpack.c.bf16 %v810_v10, %v809_v9  ;;  %v811_v12 = vld [vmem:[%s2647_s3 + $0x70] sm:$0xff]  ;;  %v1871_v17 = vpack.c.bf16 %v904_v16, %v903_v15  ;;  %v906_v51 = vld [vmem:[%s2649_s5 + $0x18] sm:$0xff] }
  0x95   : > { %v1823_v34 = vpack.c.bf16 %v798_v56, %v797_v40  ;;  %v1851_v14 = vpack.c.bf16 %v812_v13, %v811_v12  ;;  %v1409_v36 = vld [vmem:[%s2646_s2] ss:$0 sm:$0xff]  ;;  %v905_v49 = vld [vmem:[%s2649_s5 + $0x10] sm:$0xff]  ;;  %v908_v56 = vld [vmem:[%s2649_s5 + $0x28] sm:$0xff] }
  0x96   : > { %v1411_v47 = vld [vmem:[%s2649_s5 + $0x40] sm:$0xff]  ;;  %v1413_v53 = vld [vmem:[%s2649_s5 + $0x50] sm:$0xff]  ;;  %v1416_v58 = vld [vmem:[%s2649_s5 + $0x68] sm:$0xff] }
  0x97   : > { %1802 = vmatpush3.bf16.msra.mxu0 %v1801_v18  ;;  %1824 = vmatprep.subr.bf16.mxu1 %v1823_v34  ;;  %v910_v1 = vld [vmem:[%s2649_s5 + $0x38] sm:$0xff]  ;;  %v1417_v61 = vld [vmem:[%s2649_s5 + $0x70] sm:$0xff]  ;;  %v1424_v3 = vld [vmem:[%s2649_s5 + $0x88] sm:$0xff] }
  0x98   : > { %1804 = vmatprep.subr.bf16.mxu0 %v1803_v19  ;;  %1826 = vmatpush3.bf16.msra.mxu1 %v1823_v34  ;;  %v1415_v34 = vld [vmem:[%s2649_s5 + $0x60] sm:$0xff]  ;;  %v1425_v12 = vld [vmem:[%s2649_s5 + $0x90] sm:$0xff]  ;;  %v1426_v13 = vld [vmem:[%s2649_s5 + $0x98] sm:$0xff] }
  0x99   : > { %1828 = vmatprep.subr.bf16.mxu1 %v1827_v59  ;;  %v1863_v60 = vpack.c.bf16 %v1416_v58, %v1415_v34  ;;  %v1434_v34 = vld [vmem:[%s2652_s8] ss:$0 sm:$0xff] }
  0x9b   : > { %1806 = vmatpush3.bf16.msra.mxu0 %v1805_v24 }
  0x9c   : > { %1808 = vmatprep.subr.bf16.mxu0 %v1807_v25  ;;  %1830 = vmatpush3.bf16.msra.mxu1 %v1827_v59  ;;  %v909_v59 = vld [vmem:[%s2649_s5 + $0x30] sm:$0xff] }
  0x9d   : > { %1832 = vmatprep.subr.bf16.mxu1 %v1831_v62  ;;  %v1883_v63 = vpack.c.bf16 %v910_v1, %v909_v59 }
  0x9f   : > { %1810 = vmatpush3.bf16.msra.mxu0 %v1809_v30 }
  0xa0   : > { %1812 = vmatprep.subr.bf16.mxu0 %v1811_v31  ;;  %1834 = vmatpush3.bf16.msra.mxu1 %v1831_v62  ;;  %v1418_v62 = vld [vmem:[%s2649_s5 + $0x78] sm:$0xff] }
  0xa1   : > { %1836 = vmatprep.subr.bf16.mxu1 %v1835_v2  ;;  %v1867_v0 = vpack.c.bf16 %v1418_v62, %v1417_v61 }
  0xa3   : > { %1814 = vmatpush3.bf16.msra.mxu0 %v1813_v37 }
  0xa4   : > { %1816 = vmatprep.subr.bf16.mxu0 %v1815_v38  ;;  %1838 = vmatpush3.bf16.msra.mxu1 %v1835_v2  ;;  %v1423_v2 = vld [vmem:[%s2649_s5 + $0x80] sm:$0xff] }
  0xa5   : > { %1840 = vmatprep.subr.bf16.mxu1 %v1839_v5  ;;  %v1887_v4 = vpack.c.bf16 %v1424_v3, %v1423_v2 }
  0xa7   : > { %1818 = vmatpush3.bf16.msra.mxu0 %v1817_v44 }
  0xa8   : > { %1820 = vmatprep.subr.bf16.mxu0 %v1819_v45  ;;  %1842 = vmatpush3.bf16.msra.mxu1 %v1839_v5  ;;  %v1410_v5 = vld [vmem:[%s2648_s4] ss:$0 sm:$0xff] }
  0xa9   : > { %1844 = vmatprep.subr.bf16.mxu1 %v1843_v8 }
  0xab   : > { %1822 = vmatpush3.bf16.msra.mxu0 %v1821_v48  ;;  %v1412_v48 = vld [vmem:[%s2649_s5 + $0x48] sm:$0xff] }
  0xac   : > { %1846 = vmatpush3.bf16.msra.mxu1 %v1843_v8  ;;  %1872 = vmatprep.subr.bf16.mxu0 %v1871_v17  ;;  %v1855_v50 = vpack.c.bf16 %v1412_v48, %v1411_v47 }
  0xad   : > { %1848 = vmatprep.subr.bf16.mxu1 %v1847_v11 }
  0xae   : > { %774 = vmatmul.mubr.f32.vlgmr.msra.gmra.mrb[4].mxu0 %v697_v52  ;;  %v1875_v52 = vpack.c.bf16 %v906_v51, %v905_v49  ;;  %v1433_v51 = vld [vmem:[%s2650_s6] ss:$0 sm:$0xff] }
  0xaf   : > { %778 = vmatprep.mubr.f32.mxu0 %v704_v54  ;;  %1874 = vmatpush3.bf16.msra.mxu0 %v1871_v17  ;;  %v1414_v54 = vld [vmem:[%s2649_s5 + $0x58] sm:$0xff] }
  0xb0   : > { %1850 = vmatpush3.bf16.msra.mxu1 %v1847_v11  ;;  %1876 = vmatprep.subr.bf16.mxu0 %v1875_v52  ;;  %v1859_v40 = vpack.c.bf16 %v1414_v54, %v1413_v53 }
  0xb1   : > { %1852 = vmatprep.subr.bf16.mxu1 %v1851_v14 }
  0xb2   : > { %779 = vmatmul.mubr.f32.gmra.mrb[6].mxu0 %v702_v55  ;;  %v907_v55 = vld [vmem:[%s2649_s5 + $0x20] sm:$0xff] }
  0xb3   : > { %1878 = vmatpush3.bf16.msra.mxu0 %v1875_v52  ;;  %v1879_v57 = vpack.c.bf16 %v908_v56, %v907_v55 }
  0xb4   : > { %1854 = vmatpush3.bf16.msra.mxu1 %v1851_v14 }
  0xb5   : > { %1856 = vmatprep.subr.bf16.mxu1 %v1855_v50  ;;  %1880 = vmatprep.subr.bf16.mxu0 %v1879_v57 }
  0xb7   : > { %1882 = vmatpush3.bf16.msra.mxu0 %v1879_v57 }
  0xb8   : > { %1884 = vmatprep.subr.bf16.mxu0 %v1883_v63 }
  0xbb   : > { %1886 = vmatpush3.bf16.msra.mxu0 %v1883_v63 }
  0xbc   : > { %1888 = vmatprep.subr.bf16.mxu0 %v1887_v4 }
 0x161   : > { %v1476_v18 = vpop.f32.mrb[0].mxu0 }
 0x162   : > { %v1477_v20 = vpop.f32.mrb[1].mxu0 }
 0x163   : > { %v1514_v19 = vpop.f32.mrb[0].mxu1  ;;  %v1478_v22 = vadd.f32 %v1477_v20, %v1476_v18  ;;  %v1891_v18 = vpack.c.bf16 %v1426_v13, %v1425_v12 }
 0x164   : > { %v1515_v21 = vpop.f32.mrb[1].mxu1 }
 0x165   : > { %v1516_v23 = vadd.f32 %v1515_v21, %v1514_v19  ;;  %v1479_v25 = vpop.f32.mrb[2].mxu0 }
 0x166   : > { %v1480_v27 = vpop.f32.mrb[3].mxu0 }
 0x167   : > { %v653_v24 = vadd.f32 %v1516_v23, %v1478_v22  ;;  %v1517_v26 = vpop.f32.mrb[2].mxu1  ;;  %v1481_v29 = vadd.f32 %v1480_v27, %v1479_v25  ;;  %v1427_v23 = vld [vmem:[%s2649_s5 + $0xa0] sm:$0xff] }
 0x168   : > { %v1518_v28 = vpop.f32.mrb[3].mxu1 }
 0x169   : > { %v1519_v30 = vadd.f32 %v1518_v28, %v1517_v26 }
 0x16b   : > { %v658_v31 = vadd.f32 %v1519_v30, %v1481_v29  ;;  %v1429_v29 = vld [vmem:[%s2649_s5 + $0xb0] sm:$0xff]  ;;  %v1430_v30 = vld [vmem:[%s2649_s5 + $0xb8] sm:$0xff] }
 0x181   : > { %v1552_v32 = vpop.f32.mrb[4].mxu0 }
 0x182   : > { %v1553_v33 = vpop.f32.mrb[5].mxu0 }
 0x183   : > { %v1554_v35 = vadd.f32 %v1553_v33, %v1552_v32 }
 0x185   : > { %v784_v37 = vadd.f32 %v1554_v35, %v653_v24  ;;  %v1555_v38 = vpop.f32.mrb[6].mxu0  ;;  %v1428_v24 = vld [vmem:[%s2649_s5 + $0xa8] sm:$0xff] }
 0x186   : > { %v1556_v39 = vpop.f32.mrb[7].mxu0  ;;  %v1895_v28 = vpack.c.bf16 %v1428_v24, %v1427_v23  ;;  %v1192_v35 = vld [vmem:[#allocation9] sm:$0xff] }
 0x187   : > { %v1557_v41 = vadd.f32 %v1556_v39, %v1555_v38  ;;  %v793_v42 = vadd.f32 %v1409_v36, %v784_v37  ;;  %v1194_v37 = vld [vmem:[#allocation9 + $0x10] sm:$0xff]  ;;  %v1195_v39 = vld [vmem:[#allocation9 + $0x18] sm:$0xff] }
 0x189   : > { %v785_v43 = vadd.f32 %v1557_v41, %v658_v31  ;;  %v795_v44 = vmax.f32 %v793_v42, 0.0  ;;  %v1899_v31 = vpack.c.bf16 %v1430_v30, %v1429_v29  ;;  %v1907_v41 = vpack.c.bf16 %v1195_v39, %v1194_v37  ;;  %v1196_v42 = vld [vmem:[#allocation9 + $0x20] sm:$0xff] }
 0x18b   : > { %v794_v45 = vadd.f32 %v1409_v36, %v785_v43  ;;  %1648 = vmatprep.mubr.f32.mxu1 %v795_v44  ;;  %v1193_v36 = vld [vmem:[#allocation9 + $0x8] sm:$0xff] }
 0x18c   : > { %v1903_v38 = vpack.c.bf16 %v1193_v36, %v1192_v35  ;;  %v1197_v43 = vld [vmem:[#allocation9 + $0x28] sm:$0xff] }
 0x18d   : > { %v796_v46 = vmax.f32 %v794_v45, 0.0  ;;  %v1911_v44 = vpack.c.bf16 %v1197_v43, %v1196_v42  ;;  %v1198_v45 = vld [vmem:[#allocation9 + $0x30] sm:$0xff] }
 0x18f   : > { %1649 = vmatmul.mubr.f32.vlgmr.msra.gmra.mrb[4].mxu1 %v796_v46  ;;  %v1199_v46 = vld [vmem:[#allocation9 + $0x38] sm:$0xff] }
 0x190   : > { %1858 = vmatpush3.bf16.msra.mxu1 %v1855_v50  ;;  %v1915_v47 = vpack.c.bf16 %v1199_v46, %v1198_v45 }
 0x191   : > { %1860 = vmatprep.subr.bf16.mxu1 %v1859_v40 }
 0x194   : > { %1862 = vmatpush3.bf16.msra.mxu1 %v1859_v40 }
 0x195   : > { %1864 = vmatprep.subr.bf16.mxu1 %v1863_v60 }
 0x198   : > { %1866 = vmatpush3.bf16.msra.mxu1 %v1863_v60 }
 0x199   : > { %1868 = vmatprep.subr.bf16.mxu1 %v1867_v0 }
 0x19c   : > { %1870 = vmatpush3.bf16.msra.mxu1 %v1867_v0 }
 0x19d   : > { %1904 = vmatprep.subr.bf16.mxu1 %v1903_v38 }
 0x262   : > { %v1650_v6 = vpop.f32.mrb[4].mxu1 }
 0x263   : > { %v892_v7 = vadd.f32 %v1650_v6, %v1410_v5  ;;  %v886_v8 = vpop.f32.mrb[5].mxu1 }
 0x264   : > { %v887_v9 = vadd.f32 %v1410_v5, %v886_v8 }
 0x265   : > { %v896_v10 = vmax.f32 %v892_v7, 0.0 }
 0x266   : > { %v895_v11 = vmax.f32 %v887_v9, 0.0 }
 0x267   : > { %899 = vst.msk [vmem:[#allocation3 + $0x9] sm:$0xff] %vm897_vm5, %v896_v10 }
 0x268   : > { %898 = vst.msk [vmem:[#allocation3 + $0x1] sm:$0xff] %vm897_vm5, %v895_v11 }
 0x26e   : > { %v902_v14 = vld [vmem:[#allocation3 + $0x10] sm:$0x3] }
 0x26f   : > { %v900_v15 = vld [vmem:[#allocation3] sm:$0xff]  ;;  %v901_v16 = vld [vmem:[#allocation3 + $0x8] sm:$0xff]  ;;  %v926_v17 = vrot.slane %v902_v14, 1  ;;  %v1098_v32 = vrot.slane %v902_v14, 2 }
 0x270   : > { %v923_v19 = vrot.slane %v900_v15, 1  ;;  %1686 = vmatprep.mubr.msk.f32.mxu0 %vm897_vm5, %v900_v15  ;;  %v1095_v20 = vrot.slane %v900_v15, 2  ;;  %v924_v21 = vrot.slane %v901_v16, 1  ;;  %v1096_v22 = vrot.slane %v901_v16, 2 }
 0x271   : > { %1687 = vmatmul.mubr.msk.f32.vlgmr.msra.gmra.mrb[8].mxu0 %vm897_vm5, %v901_v16 }
 0x272   : > { %1890 = vmatpush3.bf16.msra.mxu0 %v1887_v4  ;;  %v925_v25 = vsel %vm496_vm2, %v923_v19, %v924_v21  ;;  %v1097_v26 = vsel %vm694_vm3, %v1095_v20, %v1096_v22  ;;  %v927_v27 = vsel %vm496_vm2, %v924_v21, %v926_v17  ;;  %v1099_v33 = vsel %vm694_vm3, %v1096_v22, %v1098_v32 }
 0x273   : > { %1667 = vmatprep.mubr.msk.f32.mxu1 %vm897_vm5, %v925_v25  ;;  %1705 = vmatprep.mubr.msk.f32.mxu0 %vm897_vm5, %v1097_v26 }
 0x274   : > { %1668 = vmatmul.mubr.msk.f32.vlgmr.msra.gmra.mrb[6].mxu1 %vm897_vm5, %v927_v27  ;;  %1892 = vmatprep.subr.bf16.mxu0 %v1891_v18 }
 0x275   : > { %1906 = vmatpush3.bf16.msra.mxu1 %v1903_v38 }
 0x276   : > { %1894 = vmatpush3.bf16.msra.mxu0 %v1891_v18  ;;  %1908 = vmatprep.subr.bf16.mxu1 %v1907_v41 }
 0x277   : > { %1896 = vmatprep.subr.bf16.mxu0 %v1895_v28 }
 0x279   : > { %1910 = vmatpush3.bf16.msra.mxu1 %v1907_v41 }
 0x27a   : > { %1898 = vmatpush3.bf16.msra.mxu0 %v1895_v28  ;;  %1912 = vmatprep.subr.bf16.mxu1 %v1911_v44 }
 0x27b   : > { %1900 = vmatprep.subr.bf16.mxu0 %v1899_v31 }
 0x27d   : > { %1914 = vmatpush3.bf16.msra.mxu1 %v1911_v44 }
 0x27e   : > { %1902 = vmatpush3.bf16.msra.mxu0 %v1899_v31  ;;  %1916 = vmatprep.subr.bf16.mxu1 %v1915_v47 }
 0x281   : > { %1706 = vmatmul.mubr.msk.f32.vlgmr.msra.gmra.mrb[8].mxu0 %vm897_vm5, %v1099_v33  ;;  %1918 = vmatpush3.bf16.msra.mxu1 %v1915_v47 }
 0x347   : > { %v1669_v48 = vpop.f32.mrb[6].mxu1 }
 0x348   : > { %v998_v49 = vpop.f32.mrb[7].mxu1 }
 0x354   : > { %v1707_v50 = vpop.f32.mrb[8].mxu0 }
 0x355   : > { %v1919_v52 = vadd.f32 %v1707_v50, %v1669_v48  ;;  %v1170_v53 = vpop.f32.mrb[9].mxu0 }
 0x356   : > { %v1920_v54 = vadd.f32 %v1170_v53, %v998_v49 }
 0x357   : > { %v1189_v55 = vadd.f32 %v1919_v52, %v1433_v51 }
 0x358   : > { %v1188_v40 = vadd.f32 %v1920_v54, %v1433_v51 }
 0x359   : > { %v1191_v57 = vmax.f32 %v1189_v55, 0.0 }
 0x35a   : > { %v1190_v56 = vmax.f32 %v1188_v40, 0.0 }
 0x35c   : > { %1724 = vmatprep.mubr.msk.f32.mxu1 %vm897_vm5, %v1190_v56 }
 0x35d   : > { %1725 = vmatmul.mubr.msk.f32.vlgmr.msra.gmra.mrb[8].mxu1 %vm897_vm5, %v1191_v57 }
 0x430   : > { %v1726_v58 = vpop.f32.mrb[8].mxu1 }
 0x431   : > { %v1285_v59 = vadd.f32 %v1726_v58, %v1434_v34  ;;  %v1279_v60 = vpop.f32.mrb[9].mxu1 }
 0x432   : > { %v1280_v1 = vadd.f32 %v1434_v34, %v1279_v60 }
 0x433   : > { %1289 = vst [vmem:[%s379_s16 + $0x8] sm:$0xff] %v1285_v59 }
 0x434   : > { %1288 = vst [vmem:[%s379_s16] sm:$0xff] %v1280_v1 }
 0x435   : > { %2096 = shalt.err (!%p2093_p2)
}
 0x436   : > { %s2097_s16 = scalar_lea.hbm %s2600_s29, 256  ;;  %s2101_s25 = scalar_lea.hbm %s2653_s9, 512 }
 0x437   : > { %p2098_p13 = scmp.ne.s32.totalorder %s2600_s29, %s2097_s16  ;;  %p2102_p4 = scmp.lt.u32.totalorder %s2600_s29, %s2653_s9 }
 0x438   : > { %p2103_p5 = scmp.lt.u32.totalorder %s2101_s25, %s2097_s16  ;;  %p2105_p11 = scmp.lt.u32.totalorder %s2097_s16, %s2600_s29 }
 0x439   : > { %p2099_p6 = pnand %p2098_p13, %p2669_p0 }
 0x43a   : > { %p2104_p8 = por %p2103_p5, %p2102_p4 }
 0x43b   : > { %p2100_p10 = pneg %p2099_p6 }
 0x43c   : > { %p2106_p1 = por %p2105_p11, %p2104_p8 }
 0x43e   : > { %p2107_p3 = pnand %p2106_p1, %p2100_p10 }
 0x440   : > { %2110 = shalt.err (!%p2107_p3)
}
 0x441   : > { %s2164_s15 = smov 128   ;;  %s2165_s13 = smov 8  }
 0x442   : > { %1933 = dma.vmem_to_hbm [thread:$0]  (%p2669_p0), %s2595_s23, 256, %s2600_s29, %s1291_s22, %s2164_s15, %s2164_s15, %s2165_s13  }
 0x443 PF: > { %s2670_s17 = sld [smem:[#allocation14_spill]]  ;;  %s1319_s14 = sand.u32 1, %s2141_s30  }
 0x444   : > { %p2672_p9 = scmp.ge.s32.totalorder %s2153_s12, 2  ;;  %s1320_s16 = scalar_lea.sflag [#allocation6], %s1319_s14 }
 0x449   : > { %p2671_p7 = scmp.ne.s32.totalorder %s2670_s17, 0 }
 0x44b   : > { %p1947_p12 = pnand %p2672_p9, %p2671_p7 }
 0x44d   : > { %2136 = dma.done.wait (!%p1947_p12), %s1320_s16, 256  }
 0x44e   : > { %2138 = vsyncadd (!%p1947_p12), %s1320_s16, 4294967040  ;;  %p23_p2 = scmp.ge.s32.totalorder %s2326_s24, 4   ;;  %s2673_s30 = smov %s2145_s10 }
 0x44f   : > { %s2674_s10 = smov %s2149_s11  ;;  %s2675_s11 = smov %s2342_s27 }
 0x450   : > { %s2676_s12 = smov %s2326_s24  ;;  %25 = sbr.rel (!%p23_p2) target bundleno = 6 (0x6), region = 114 }
 0x457   :  { %1325 = vsyncpa [#allocation5], 1 }
 0x458   :  { %1327 = vsyncpa [#allocation5 + $0x1], 1 }
 0x459   :  { %1328 = vsyncpa [#allocation8], 1 }
 0x45a   :  { %1329 = vsyncpa [#allocation6], 1 }
 0x45b   :  { %1331 = vsyncpa [#allocation6 + $0x1], 1 }

</bundles_post_ra>
